<compile_context>
chip_gen: v7x
topology: tpu7x:2x2x1
jax: 0.10.0
libtpu: 0.0.40
codegen_flags: <defaults>
</compile_context>

<pallas_src>
import jax
import jax.numpy as jnp
import numpy as np
from jax.experimental import pallas as pl
from jax.experimental.pallas import tpu as pltpu

KS = 7
PAD = KS // 2


# --------------------------------------------------------------------------
# Hardware introspection (generation-aware budgets).
# --------------------------------------------------------------------------
def _tpu_vmem_capacity_bytes():
    try:
        return int(pltpu.get_tpu_info().vmem_capacity_bytes)
    except Exception:
        return 64 * 1024 * 1024  # conservative: assume v7x (smallest VMEM)


def _tpu_num_tensorcores_per_chip():
    try:
        kind = jax.devices()[0].device_kind.lower()
    except Exception:
        return 1
    return 2 if ("v7" in kind or "tpu7" in kind) else 1


def _round_up(x, m):
    return ((x + m - 1) // m) * m


def _pick_batch_tile(batch, per_image_bytes, fixed_bytes, usable_bytes,
                     prefer_two_steps):
    """Largest divisor of `batch` whose VMEM footprint fits the budget.

    On 2-TensorCore chips (v7x) a >= 2-step grid is preferred so both cores
    get work; on single-core chips (v5e/v6e) the biggest fitting tile wins.
    """
    divisors = [d for d in range(1, batch + 1) if batch % d == 0]
    fitting = [d for d in divisors
               if fixed_bytes + d * per_image_bytes <= usable_bytes]
    if not fitting:
        fitting = [1]  # single image exceeds budget; let the compiler try
    if prefer_two_steps:
        multi = [d for d in fitting if batch // d >= 2]
        if multi:
            return max(multi)
    return max(fitting)


# --------------------------------------------------------------------------
# Dense path: 7x7 conv as a single fused MXU matmul.
# --------------------------------------------------------------------------
def _conv_as_matmul_matrix(weight, H, W, HWp, C):
    """(2*HWp, HWp) bf16 matrix M with conv(cat)[b, p] = sum_q pooled[b, q] M[q, p].

    weight: (1, 2, KS, KS) PyTorch OIHW conv weight, no bias.  Zero padding is
    baked in, the channel-mean 1/C is folded into channel 0 (kernel feeds the
    raw channel sum), and rows/cols >= H*W (lane padding) are zero.
    """
    HW = H * W
    pi, pj = jnp.meshgrid(jnp.arange(H), jnp.arange(W), indexing="ij")
    pi = pi.reshape(-1)
    pj = pj.reshape(-1)
    # Axis 0 = input pixel q, axis 1 = output pixel p.
    dh = pi[:, None] - pi[None, :] + PAD
    dw = pj[:, None] - pj[None, :] + PAD
    valid = (dh >= 0) & (dh < KS) & (dw >= 0) & (dw < KS)
    dh_c = jnp.clip(dh, 0, KS - 1)
    dw_c = jnp.clip(dw, 0, KS - 1)
    w2 = weight[0].astype(jnp.float32)          # (2, KS, KS)
    w2 = w2.at[0].multiply(1.0 / C)             # fold the channel mean
    mat = w2[:, dh_c, dw_c]                     # (2, HW, HW)
    mat = jnp.where(valid[None, :, :], mat, 0.0)
    if HWp != HW:
        mat = jnp.pad(mat, ((0, 0), (0, HWp - HW), (0, HWp - HW)))
    return mat.reshape(2 * HWp, HWp).astype(jnp.bfloat16)


def _dense_kernel(x_ref, m_ref, o_ref):
    # x_ref: (bt, C, HWp) native dtype; m_ref: (2*HWp, HWp) bf16; o_ref like x.
    s = jnp.sum(x_ref[...], axis=1, dtype=jnp.float32)       # channel sum
    mx = jnp.max(x_ref[...], axis=1).astype(jnp.float32)     # channel max
    pooled = jnp.concatenate([s, mx], axis=-1).astype(jnp.bfloat16)  # (bt, 2*HWp)
    logits = jnp.dot(pooled, m_ref[...], preferred_element_type=jnp.float32)
    scale = jax.nn.sigmoid(logits).astype(x_ref.dtype)        # (bt, HWp)
    o_ref[...] = x_ref[...] * scale[:, None, :]               # native-dtype store


def _spatial_attention_dense(x, weight, usable_bytes, vmem_limit, prefer_two):
    B, C, H, W = x.shape
    HW = H * W
    HWp = _round_up(HW, 128)

    x3 = x.reshape(B, C, HW)
    if HWp != HW:
        x3 = jnp.pad(x3, ((0, 0), (0, 0), (0, HWp - HW)))
    conv_mat = _conv_as_matmul_matrix(weight, H, W, HWp, C)   # (2*HWp, HWp) bf16
    matrix_bytes = conv_mat.size * conv_mat.dtype.itemsize

    itemsize = x.dtype.itemsize
    # in + out tiles (double-buffered) + f32 sum/max/logits/pooled temporaries.
    per_image = 4 * C * HWp * itemsize + 6 * HWp * 4
    bt = _pick_batch_tile(B, per_image, matrix_bytes, usable_bytes, prefer_two)
    grid = (B // bt,)

    def _call(matrix_pipeline_mode):
        return pl.pallas_call(
            _dense_kernel,
            out_shape=jax.ShapeDtypeStruct((B, C, HWp), x.dtype),
            grid=grid,
            in_specs=[
                pl.BlockSpec((bt, C, HWp), lambda b: (b, 0, 0)),
                # Constant block index -> fetched into VMEM once, reused.
                pl.BlockSpec((2 * HWp, HWp), lambda b: (0, 0),
                             pipeline_mode=matrix_pipeline_mode),
            ],
            out_specs=pl.BlockSpec((bt, C, HWp), lambda b: (b, 0, 0)),
            compiler_params=pltpu.CompilerParams(
                dimension_semantics=("parallel",),
                vmem_limit_bytes=vmem_limit),
        )(x3, conv_mat)

    try:
        # Grid-invariant operand: single-buffer it (no wasted double buffer).
        out3 = _call(pl.Buffered(1))
    except Exception:
        # Older runtimes may not support pipeline_mode; default buffering.
        out3 = _call(None)

    if HWp != HW:
        out3 = out3[:, :, :HW]
    return out3.reshape(B, C, H, W)


# --------------------------------------------------------------------------
# Fallback path for large H*W: 49-tap slice-based VPU conv on the pooled map.
# --------------------------------------------------------------------------
def _make_slice_kernel(H, W):
    def kernel(x_ref, w_ref, o_ref, pad_ref):
        # x_ref: (bt, C, H, W); w_ref: SMEM (2*KS*KS,) f32 (channel 0 pre-scaled
        # by 1/C); o_ref like x; pad_ref: VMEM (bt, 2, H+2P, W+2P) f32 scratch.
        s = jnp.sum(x_ref[...], axis=1, dtype=jnp.float32)      # (bt, H, W)
        mx = jnp.max(x_ref[...], axis=1).astype(jnp.float32)    # (bt, H, W)
        pad_ref[...] = jnp.zeros_like(pad_ref)                  # zero padding
        pad_ref[:, 0, PAD:PAD + H, PAD:PAD + W] = s
        pad_ref[:, 1, PAD:PAD + H, PAD:PAD + W] = mx
        bt = s.shape[0]
        logits = jnp.zeros((bt, H, W), jnp.float32)
        for c in range(2):
            for i in range(KS):
                for j in range(KS):
                    w = w_ref[c * KS * KS + i * KS + j]
                    logits = logits + w * pad_ref[:, c, i:i + H, j:j + W]
        scale = jax.nn.sigmoid(logits).astype(x_ref.dtype)      # (bt, H, W)
        o_ref[...] = x_ref[...] * scale[:, None, :, :]
    return kernel


def _spatial_attention_slices(x, weight, usable_bytes, vmem_limit, prefer_two):
    B, C, H, W = x.shape
    HW = H * W
    Hp2, Wp2 = H + 2 * PAD, W + 2 * PAD

    w_flat = weight[0].astype(jnp.float32)        # (2, KS, KS)
    w_flat = w_flat.at[0].multiply(1.0 / C)       # fold the channel mean
    w_flat = w_flat.reshape(-1)                   # (98,) -> SMEM scalars

    itemsize = x.dtype.itemsize
    per_image = 4 * C * HW * itemsize + (2 * Hp2 * Wp2 + 4 * HW) * 4
    bt = _pick_batch_tile(B, per_image, 0, usable_bytes, prefer_two)
    grid = (B // bt,)

    return pl.pallas_call(
        _make_slice_kernel(H, W),
        out_shape=jax.ShapeDtypeStruct((B, C, H, W), x.dtype),
        grid=grid,
        in_specs=[
            pl.BlockSpec((bt, C, H, W), lambda b: (b, 0, 0, 0)),
            pl.BlockSpec(memory_space=pltpu.MemorySpace.SMEM),
        ],
        out_specs=pl.BlockSpec((bt, C, H, W), lambda b: (b, 0, 0, 0)),
        scratch_shapes=[pltpu.VMEM((bt, 2, Hp2, Wp2), jnp.float32)],
        compiler_params=pltpu.CompilerParams(
            dimension_semantics=("parallel",),
            vmem_limit_bytes=vmem_limit),
    )(x, w_flat)


# --------------------------------------------------------------------------
# Public wrapper.
# --------------------------------------------------------------------------
def spatial_attention(x, weight, *, force_path=None):
    """CBAM SpatialAttention forward. x: (B, C, H, W); weight: (1, 2, KS, KS)."""
    B, C, H, W = x.shape
    HW = H * W
    HWp = _round_up(HW, 128)

    vmem_cap = _tpu_vmem_capacity_bytes()
    vmem_limit = min(vmem_cap * 3 // 4, 96 * 1024 * 1024)   # 48 MiB v7x, 96 MiB v5e/v6e
    usable = vmem_limit - 4 * 1024 * 1024                   # headroom for Mosaic scratch
    prefer_two = _tpu_num_tensorcores_per_chip() >= 2

    # O(HW^2) guard: dense conv-as-matmul only when the bf16 matrix leaves
    # room for the x tiles; otherwise the 49-tap VPU conv on the pooled map.
    matrix_bytes = 2 * HWp * HWp * 2
    use_dense = matrix_bytes <= usable // 3
    if force_path == "dense":
        use_dense = True
    elif force_path == "slices":
        use_dense = False

    if use_dense:
        return _spatial_attention_dense(x, weight, usable, vmem_limit, prefer_two)
    return _spatial_attention_slices(x, weight, usable, vmem_limit, prefer_two)


def spatial_attention_ref(x, weight):
    avg = jnp.mean(x, axis=1, keepdims=True)
    mx = jnp.max(x, axis=1, keepdims=True)
    cat = jnp.concatenate([avg, mx], axis=1)
    conv = jax.lax.conv_general_dilated(
        cat, weight.astype(jnp.float32), window_strides=(1, 1),
        padding=[(PAD, PAD), (PAD, PAD)],
        dimension_numbers=("NCHW", "OIHW", "NCHW"),
        precision=jax.lax.Precision.HIGHEST)
    return x * jax.nn.sigmoid(conv)


if __name__ == "__main__":
    key = jax.random.PRNGKey(0)
    kx, kw = jax.random.split(key)

    # Deterministic PyTorch-style kaiming-uniform init, fan_in = 2*7*7.
    fan_in = 2 * KS * KS
    bound = 1.0 / np.sqrt(fan_in)
    weight = jax.random.uniform(kw, (1, 2, KS, KS), dtype=jnp.float32,
                                minval=-bound, maxval=bound)

    # 1) Dense MXU path; HW = 256 is already a multiple of 128 (no padding).
    x = jax.random.normal(kx, (2, 4, 16, 16), dtype=jnp.float32)
    out = jax.block_until_ready(spatial_attention(x, weight))
    ref = spatial_attention_ref(x, weight)
    # bf16 MXU operands -> ~1e-3-level deviation from the f32 HIGHEST reference.
    np.testing.assert_allclose(np.asarray(out), np.asarray(ref),
                               rtol=2e-2, atol=2e-2)

    # 2) Dense path with lane padding (12*12 = 144 -> padded to 256).
    x2 = jax.random.normal(jax.random.fold_in(kx, 1), (2, 4, 12, 12),
                           dtype=jnp.float32)
    out2 = jax.block_until_ready(spatial_attention(x2, weight, force_path="dense"))
    np.testing.assert_allclose(np.asarray(out2),
                               np.asarray(spatial_attention_ref(x2, weight)),
                               rtol=2e-2, atol=2e-2)

    # 3) Slice/VPU fallback (auto-selected when the dense matrix would not fit
    #    the generation's VMEM budget, e.g. 56x56 maps on v7x); forced here at
    #    a small shape to verify the path. Pure f32 -> tight tolerance.
    x3 = jax.random.normal(jax.random.fold_in(kx, 2), (2, 4, 14, 14),
                           dtype=jnp.float32)
    out3 = jax.block_until_ready(spatial_attention(x3, weight, force_path="slices"))
    np.testing.assert_allclose(np.asarray(out3),
                               np.asarray(spatial_attention_ref(x3, weight)),
                               rtol=1e-3, atol=1e-3)

    print("KERNEL_OK")
</pallas_src>

<mosaic_0001>
module attributes {stable_mosaic.version = 11 : i64} {
  func.func @_dense_kernel(%arg0: i32, %arg1: memref<2x4x256xf32, #tpu.memory_space<vmem>>, %arg2: memref<512x256xbf16, #tpu.memory_space<vmem>>, %arg3: memref<2x4x256xf32, #tpu.memory_space<vmem>>) attributes {dimension_semantics = [#tpu.dimension_semantics<parallel>], iteration_bounds = array<i64: 1>, scalar_prefetch = 0 : i64, scratch_operands = 0 : i64, tpu.core_type = #tpu.core_type<tc>, window_params = [{transform_indices = @transform_0, window_bounds = array<i64: 2, 4, 256>}, {pipeline_mode = #tpu.pipeline_mode<synchronous>, transform_indices = @transform_1, window_bounds = array<i64: 512, 256>}, {transform_indices = @transform_2, window_bounds = array<i64: 2, 4, 256>}]} {
    %c0 = arith.constant 0 : index
    %c0_0 = arith.constant 0 : index
    %c0_1 = arith.constant 0 : index
    %0 = vector.load %arg1[%c0, %c0_0, %c0_1] : memref<2x4x256xf32, #tpu.memory_space<vmem>>, vector<2x4x256xf32>
    %cst = arith.constant dense<0.000000e+00> : vector<2x256xf32>
    %1 = vector.multi_reduction <add>, %0, %cst [1] : vector<2x4x256xf32> to vector<2x256xf32>
    %c0_2 = arith.constant 0 : index
    %c0_3 = arith.constant 0 : index
    %c0_4 = arith.constant 0 : index
    %2 = vector.load %arg1[%c0_2, %c0_3, %c0_4] : memref<2x4x256xf32, #tpu.memory_space<vmem>>, vector<2x4x256xf32>
    %cst_5 = arith.constant dense<0xFF800000> : vector<2x256xf32>
    %3 = vector.multi_reduction <maximumf>, %2, %cst_5 [1] : vector<2x4x256xf32> to vector<2x256xf32>
    %4 = tpu.concatenate %1, %3 in 1 : vector<2x256xf32>, vector<2x256xf32> -> vector<2x512xf32>
    %5 = arith.truncf %4 : vector<2x512xf32> to vector<2x512xbf16>
    %c0_6 = arith.constant 0 : index
    %c0_7 = arith.constant 0 : index
    %6 = vector.load %arg2[%c0_6, %c0_7] : memref<512x256xbf16, #tpu.memory_space<vmem>>, vector<512x256xbf16>
    %cst_8 = arith.constant dense<0.000000e+00> : vector<2x256xf32>
    %7 = tpu.matmul %5, %6, %cst_8 {dimension_numbers = #tpu.dot_dimension_numbers<[1], [0], [0], [1], [0, 0, 1, 1], [], []>} : vector<2x512xbf16>, vector<512x256xbf16>, vector<2x256xf32> -> vector<2x256xf32>
    %8 = arith.negf %7 : vector<2x256xf32>
    %9 = math.exp %8 : vector<2x256xf32>
    %cst_9 = arith.constant 1.000000e+00 : f32
    %10 = vector.broadcast %cst_9 : f32 to vector<2x256xf32>
    %11 = arith.addf %10, %9 : vector<2x256xf32>
    %12 = arith.divf %10, %11 : vector<2x256xf32>
    %c0_10 = arith.constant 0 : index
    %c0_11 = arith.constant 0 : index
    %c0_12 = arith.constant 0 : index
    %13 = vector.load %arg1[%c0_10, %c0_11, %c0_12] : memref<2x4x256xf32, #tpu.memory_space<vmem>>, vector<2x4x256xf32>
    %14 = vector.shape_cast %12 : vector<2x256xf32> to vector<2x1x256xf32>
    %15 = vector.broadcast %14 : vector<2x1x256xf32> to vector<2x4x256xf32>
    %16 = arith.mulf %13, %15 : vector<2x4x256xf32>
    %c0_13 = arith.constant 0 : index
    %c0_14 = arith.constant 0 : index
    %c0_15 = arith.constant 0 : index
    %17 = vector.load %arg3[%c0_13, %c0_14, %c0_15] : memref<2x4x256xf32, #tpu.memory_space<vmem>>, vector<2x4x256xf32>
    tpu.vector_store %arg3[%c0_13, %c0_14, %c0_15], %16 {strides = array<i32>} : memref<2x4x256xf32, #tpu.memory_space<vmem>>, vector<2x4x256xf32>,
    return
  }
  func.func @transform_0(%arg0: i32) -> (i32, i32, i32) {
    %c0_i32 = arith.constant 0 : i32
    %c0_i32_0 = arith.constant 0 : i32
    %c0_i32_1 = arith.constant 0 : i32
    return %arg0, %c0_i32, %c0_i32_0 : i32, i32, i32
  }
  func.func @transform_1(%arg0: i32) -> (i32, i32) {
    %c0_i32 = arith.constant 0 : i32
    %c0_i32_0 = arith.constant 0 : i32
    %c0_i32_1 = arith.constant 0 : i32
    return %c0_i32, %c0_i32_0 : i32, i32
  }
  func.func @transform_2(%arg0: i32) -> (i32, i32, i32) {
    %c0_i32 = arith.constant 0 : i32
    %c0_i32_0 = arith.constant 0 : i32
    %c0_i32_1 = arith.constant 0 : i32
    return %arg0, %c0_i32, %c0_i32_0 : i32, i32, i32
  }
}

module attributes {stable_mosaic.version = 11 : i64} {
  func.func @_dense_kernel(%arg0: i32, %arg1: memref<2x4x256xf32, #tpu.memory_space<vmem>>, %arg2: memref<512x256xbf16, #tpu.memory_space<vmem>>, %arg3: memref<2x4x256xf32, #tpu.memory_space<vmem>>) attributes {dimension_semantics = [#tpu.dimension_semantics<parallel>], iteration_bounds = array<i64: 1>, scalar_prefetch = 0 : i64, scratch_operands = 0 : i64, tpu.core_type = #tpu.core_type<tc>, window_params = [{transform_indices = @transform_0, window_bounds = array<i64: 2, 4, 256>}, {pipeline_mode = #tpu.pipeline_mode<synchronous>, transform_indices = @transform_1, window_bounds = array<i64: 512, 256>}, {transform_indices = @transform_2, window_bounds = array<i64: 2, 4, 256>}]} {
    %c0 = arith.constant 0 : index
    %c0_0 = arith.constant 0 : index
    %c0_1 = arith.constant 0 : index
    %0 = vector.load %arg1[%c0, %c0_0, %c0_1] : memref<2x4x256xf32, #tpu.memory_space<vmem>>, vector<2x4x256xf32>
    %cst = arith.constant dense<0.000000e+00> : vector<2x256xf32>
    %1 = vector.multi_reduction <add>, %0, %cst [1] : vector<2x4x256xf32> to vector<2x256xf32>
    %c0_2 = arith.constant 0 : index
    %c0_3 = arith.constant 0 : index
    %c0_4 = arith.constant 0 : index
    %2 = vector.load %arg1[%c0_2, %c0_3, %c0_4] : memref<2x4x256xf32, #tpu.memory_space<vmem>>, vector<2x4x256xf32>
    %cst_5 = arith.constant dense<0xFF800000> : vector<2x256xf32>
    %3 = vector.multi_reduction <maximumf>, %2, %cst_5 [1] : vector<2x4x256xf32> to vector<2x256xf32>
    %4 = tpu.concatenate %1, %3 in 1 : vector<2x256xf32>, vector<2x256xf32> -> vector<2x512xf32>
    %5 = arith.truncf %4 : vector<2x512xf32> to vector<2x512xbf16>
    %c0_6 = arith.constant 0 : index
    %c0_7 = arith.constant 0 : index
    %6 = vector.load %arg2[%c0_6, %c0_7] : memref<512x256xbf16, #tpu.memory_space<vmem>>, vector<512x256xbf16>
    %cst_8 = arith.constant dense<0.000000e+00> : vector<2x256xf32>
    %7 = tpu.matmul %5, %6, %cst_8 {dimension_numbers = #tpu.dot_dimension_numbers<[1], [0], [0], [1], [0, 0, 1, 1], [], []>} : vector<2x512xbf16>, vector<512x256xbf16>, vector<2x256xf32> -> vector<2x256xf32>
    %8 = arith.negf %7 : vector<2x256xf32>
    %9 = math.exp %8 : vector<2x256xf32>
    %cst_9 = arith.constant 1.000000e+00 : f32
    %10 = vector.broadcast %cst_9 : f32 to vector<2x256xf32>
    %11 = arith.addf %10, %9 : vector<2x256xf32>
    %12 = arith.divf %10, %11 : vector<2x256xf32>
    %c0_10 = arith.constant 0 : index
    %c0_11 = arith.constant 0 : index
    %c0_12 = arith.constant 0 : index
    %13 = vector.load %arg1[%c0_10, %c0_11, %c0_12] : memref<2x4x256xf32, #tpu.memory_space<vmem>>, vector<2x4x256xf32>
    %14 = vector.shape_cast %12 : vector<2x256xf32> to vector<2x1x256xf32>
    %15 = vector.broadcast %14 : vector<2x1x256xf32> to vector<2x4x256xf32>
    %16 = arith.mulf %13, %15 : vector<2x4x256xf32>
    %c0_13 = arith.constant 0 : index
    %c0_14 = arith.constant 0 : index
    %c0_15 = arith.constant 0 : index
    %17 = vector.load %arg3[%c0_13, %c0_14, %c0_15] : memref<2x4x256xf32, #tpu.memory_space<vmem>>, vector<2x4x256xf32>
    tpu.vector_store %arg3[%c0_13, %c0_14, %c0_15], %16 {strides = array<i32>} : memref<2x4x256xf32, #tpu.memory_space<vmem>>, vector<2x4x256xf32>,
    return
  }
  func.func @transform_0(%arg0: i32) -> (i32, i32, i32) {
    %c0_i32 = arith.constant 0 : i32
    %c0_i32_0 = arith.constant 0 : i32
    %c0_i32_1 = arith.constant 0 : i32
    return %arg0, %c0_i32, %c0_i32_0 : i32, i32, i32
  }
  func.func @transform_1(%arg0: i32) -> (i32, i32) {
    %c0_i32 = arith.constant 0 : i32
    %c0_i32_0 = arith.constant 0 : i32
    %c0_i32_1 = arith.constant 0 : i32
    return %c0_i32, %c0_i32_0 : i32, i32
  }
  func.func @transform_2(%arg0: i32) -> (i32, i32, i32) {
    %c0_i32 = arith.constant 0 : i32
    %c0_i32_0 = arith.constant 0 : i32
    %c0_i32_1 = arith.constant 0 : i32
    return %arg0, %c0_i32, %c0_i32_0 : i32, i32, i32
  }
}

</mosaic_0001>

<bundles_post_ra>
// kernel: tpu_custom_call.1
= control target key start
LH: loop header
LB: loop body
LE: loop exit
PB: predicated region body
PF: predicated region fallthrough
CT: control target
= control target key end

     0   :  { %7 = vsyncpa [#allocation3], 0  ;;  %s1015_s0 = inlined_call_operand.hbm [shape: f32[2,4,256], index: 0, kind: input, shape index: {}]   ;;  %s1016_s1 = inlined_call_operand.hbm [shape: bf16[512,256], index: 1, kind: input, shape index: {}]   ;;  %s1017_s2 = inlined_call_operand.hbm [shape: f32[2,4,256], index: 2, kind: output, shape index: {}]  }
   0x1   :  { %8 = vsyncpa [#allocation6], 0 }
   0x2   :  { %9 = vsyncpa [#allocation4], 0  ;;  %s923_s9 = smov [#allocation2]   ;;  %s851_s13 = scalar_lea.hbm %s1015_s0, 256 }
   0x3   :  { %s15_s10 = sshll.u32 %s923_s9, 4  ;;  %p852_p0 = scmp.ne.s32.totalorder %s1015_s0, %s851_s13  ;;  %s16_s10 = int_to_ptr.vmem [resolvable:$true] %s15_s10 }
   0x4   :  { %p855_p1 = scmp.lt.u32.totalorder %s851_s13, %s1015_s0 }
   0x6   :  { %p857_p2 = pnand %p855_p1, %p852_p0 }
   0x8   :  { %860 = shalt.err (!%p857_p2)
}
   0x9   :  { %s861_s18 = scalar_lea.vmem %s16_s10, 256  ;;  %p866_p4 = scmp.lt.s32.totalorder %s16_s10, %s16_s10 }
   0xa   :  { %p862_p3 = scmp.ne.s32.totalorder %s16_s10, %s861_s18  ;;  %p867_p5 = scmp.lt.s32.totalorder %s861_s18, %s861_s18 }
   0xc   :  { %p868_p6 = por %p867_p5, %p866_p4 }
   0xe   :  { %p869_p7 = pnand %p868_p6, %p862_p3 }
  0x10   :  { %872 = shalt.err (!%p869_p7)
}
  0x11   :  { %s924_s19 = smov 128   ;;  %s925_s20 = smov 8  }
  0x12   :  { %21 = dma.hbm_to_vmem [thread:$0]  %s1015_s0, 256, %s16_s10, [#allocation3], %s924_s19, %s924_s19, %s925_s20  }
  0x13   :  { %s926_s23 = smov [#allocation5]   ;;  %s873_s27 = scalar_lea.hbm %s1016_s1, 8192 }
  0x14   :  { %s27_s24 = sshll.u32 %s926_s23, 4  ;;  %p874_p8 = scmp.ne.s32.totalorder %s1016_s1, %s873_s27  ;;  %s28_s24 = int_to_ptr.vmem [resolvable:$true] %s27_s24 }
  0x15   :  { %p877_p9 = scmp.lt.u32.totalorder %s873_s27, %s1016_s1 }
  0x17   :  { %p879_p10 = pnand %p877_p9, %p874_p8 }
  0x19   :  { %882 = shalt.err (!%p879_p10)
}
  0x1a   :  { %s883_s4 = scalar_lea.vmem %s28_s24, 8192  ;;  %p888_p12 = scmp.lt.s32.totalorder %s28_s24, %s28_s24 }
  0x1b   :  { %p884_p11 = scmp.ne.s32.totalorder %s28_s24, %s883_s4  ;;  %p889_p13 = scmp.lt.s32.totalorder %s883_s4, %s883_s4 }
  0x1d   :  { %p890_p0 = por %p889_p13, %p888_p12 }
  0x1f   :  { %p891_p1 = pnand %p890_p0, %p884_p11 }
  0x21   :  { %894 = shalt.err (!%p891_p1)
}
  0x22   :  { %33 = dma.hbm_to_vmem [thread:$0]  %s1016_s1, 8192, %s28_s24, [#allocation6], %s924_s19, %s924_s19, %s925_s20  }
  0x23   :  { %917 = dma.done.wait [#allocation3], 256  }
  0x24   :  { %918 = vsyncadd [#allocation3], 4294967040 }
  0x25   :  { %919 = dma.done.wait [#allocation6], 8192  }
  0x26   :  { %920 = vsyncadd [#allocation6], 4294959104  ;;  %v745_v0 = vld [vmem:[#allocation5 + $0x4] ss:$8 sps:$4 sm:$0xff]   ;;  %v749_v2 = vld [vmem:[#allocation5] ss:$8 sps:$4 sm:$0xff]  }
  0x27   :  { %v747_v1 = vld [vmem:[#allocation5 + $0x104] ss:$8 sps:$4 sm:$0xff]   ;;  %510 = vmatprep.subr.bf16.mxu1 %v745_v0  ;;  %v750_v3 = vld [vmem:[#allocation5 + $0x100] ss:$8 sps:$4 sm:$0xff]   ;;  %v751_v4 = vld [vmem:[#allocation5 + $0x14] ss:$8 sps:$4 sm:$0xff]  }
  0x28   :  { %551 = vmatprep.subr.bf16.mxu0 %v747_v1  ;;  %511 = vmatpush1.bf16.msra.mxu1 %v749_v2  ;;  %v753_v5 = vld [vmem:[#allocation5 + $0x114] ss:$8 sps:$4 sm:$0xff]   ;;  %v755_v6 = vld [vmem:[#allocation5 + $0x10] ss:$8 sps:$4 sm:$0xff]   ;;  %v757_v8 = vld [vmem:[#allocation5 + $0x24] ss:$8 sps:$4 sm:$0xff]  }
  0x29   :  { %552 = vmatpush1.bf16.msra.mxu0 %v750_v3  ;;  %512 = vmatprep.subr.bf16.mxu1 %v751_v4  ;;  %v756_v7 = vld [vmem:[#allocation5 + $0x110] ss:$8 sps:$4 sm:$0xff]   ;;  %v759_v9 = vld [vmem:[#allocation5 + $0x124] ss:$8 sps:$4 sm:$0xff]   ;;  %v761_v10 = vld [vmem:[#allocation5 + $0x20] ss:$8 sps:$4 sm:$0xff]  }
  0x2a   :  { %553 = vmatprep.subr.bf16.mxu0 %v753_v5  ;;  %v762_v11 = vld [vmem:[#allocation5 + $0x120] ss:$8 sps:$4 sm:$0xff]   ;;  %v763_v12 = vld [vmem:[#allocation5 + $0x34] ss:$8 sps:$4 sm:$0xff]   ;;  %v767_v14 = vld [vmem:[#allocation5 + $0x30] ss:$8 sps:$4 sm:$0xff]  }
  0x2b   :  { %v765_v13 = vld [vmem:[#allocation5 + $0x134] ss:$8 sps:$4 sm:$0xff]   ;;  %v768_v15 = vld [vmem:[#allocation5 + $0x130] ss:$8 sps:$4 sm:$0xff]   ;;  %v769_v16 = vld [vmem:[#allocation5 + $0x44] ss:$8 sps:$4 sm:$0xff]  }
  0x2c   :  { %513 = vmatpush1.bf16.msra.mxu1 %v755_v6  ;;  %v771_v17 = vld [vmem:[#allocation5 + $0x144] ss:$8 sps:$4 sm:$0xff]   ;;  %v773_v18 = vld [vmem:[#allocation5 + $0x40] ss:$8 sps:$4 sm:$0xff]   ;;  %v775_v20 = vld [vmem:[#allocation5 + $0x54] ss:$8 sps:$4 sm:$0xff]  }
  0x2d   :  { %554 = vmatpush1.bf16.msra.mxu0 %v756_v7  ;;  %514 = vmatprep.subr.bf16.mxu1 %v757_v8  ;;  %v774_v19 = vld [vmem:[#allocation5 + $0x140] ss:$8 sps:$4 sm:$0xff]   ;;  %v777_v21 = vld [vmem:[#allocation5 + $0x154] ss:$8 sps:$4 sm:$0xff]   ;;  %v779_v22 = vld [vmem:[#allocation5 + $0x50] ss:$8 sps:$4 sm:$0xff]  }
  0x2e   :  { %555 = vmatprep.subr.bf16.mxu0 %v759_v9  ;;  %v780_v23 = vld [vmem:[#allocation5 + $0x150] ss:$8 sps:$4 sm:$0xff]   ;;  %v781_v24 = vld [vmem:[#allocation5 + $0x64] ss:$8 sps:$4 sm:$0xff]   ;;  %v785_v26 = vld [vmem:[#allocation5 + $0x60] ss:$8 sps:$4 sm:$0xff]  }
  0x2f   :  { %v783_v25 = vld [vmem:[#allocation5 + $0x164] ss:$8 sps:$4 sm:$0xff]   ;;  %v786_v27 = vld [vmem:[#allocation5 + $0x160] ss:$8 sps:$4 sm:$0xff]   ;;  %v787_v28 = vld [vmem:[#allocation5 + $0x74] ss:$8 sps:$4 sm:$0xff]  }
  0x30   :  { %515 = vmatpush1.bf16.msra.mxu1 %v761_v10  ;;  %v789_v29 = vld [vmem:[#allocation5 + $0x174] ss:$8 sps:$4 sm:$0xff]   ;;  %v791_v30 = vld [vmem:[#allocation5 + $0x70] ss:$8 sps:$4 sm:$0xff]   ;;  %v793_v32 = vld [vmem:[#allocation5 + $0x84] ss:$8 sps:$4 sm:$0xff]  }
  0x31   :  { %556 = vmatpush1.bf16.msra.mxu0 %v762_v11  ;;  %516 = vmatprep.subr.bf16.mxu1 %v763_v12  ;;  %v792_v31 = vld [vmem:[#allocation5 + $0x170] ss:$8 sps:$4 sm:$0xff]   ;;  %v795_v33 = vld [vmem:[#allocation5 + $0x184] ss:$8 sps:$4 sm:$0xff]   ;;  %v797_v34 = vld [vmem:[#allocation5 + $0x80] ss:$8 sps:$4 sm:$0xff]  }
  0x32   :  { %557 = vmatprep.subr.bf16.mxu0 %v765_v13  ;;  %v798_v35 = vld [vmem:[#allocation5 + $0x180] ss:$8 sps:$4 sm:$0xff]   ;;  %v799_v36 = vld [vmem:[#allocation5 + $0x94] ss:$8 sps:$4 sm:$0xff]   ;;  %v803_v38 = vld [vmem:[#allocation5 + $0x90] ss:$8 sps:$4 sm:$0xff]  }
  0x33   :  { %v801_v37 = vld [vmem:[#allocation5 + $0x194] ss:$8 sps:$4 sm:$0xff]   ;;  %v804_v39 = vld [vmem:[#allocation5 + $0x190] ss:$8 sps:$4 sm:$0xff]   ;;  %v805_v40 = vld [vmem:[#allocation5 + $0xa4] ss:$8 sps:$4 sm:$0xff]  }
  0x34   :  { %517 = vmatpush1.bf16.msra.mxu1 %v767_v14  ;;  %v807_v41 = vld [vmem:[#allocation5 + $0x1a4] ss:$8 sps:$4 sm:$0xff]   ;;  %v809_v42 = vld [vmem:[#allocation5 + $0xa0] ss:$8 sps:$4 sm:$0xff]   ;;  %v811_v44 = vld [vmem:[#allocation5 + $0xb4] ss:$8 sps:$4 sm:$0xff]  }
  0x35   :  { %558 = vmatpush1.bf16.msra.mxu0 %v768_v15  ;;  %518 = vmatprep.subr.bf16.mxu1 %v769_v16  ;;  %v810_v43 = vld [vmem:[#allocation5 + $0x1a0] ss:$8 sps:$4 sm:$0xff]   ;;  %vm48_vm0 = vcmask 1043456   ;;  %v813_v45 = vld [vmem:[#allocation5 + $0x1b4] ss:$8 sps:$4 sm:$0xff]   ;;  %vm109_vm1 = vcmask 1041409  }
  0x36   :  { %559 = vmatprep.subr.bf16.mxu0 %v771_v17  ;;  %v815_v46 = vld [vmem:[#allocation5 + $0xb0] ss:$8 sps:$4 sm:$0xff]   ;;  %v817_v53 = vld [vmem:[#allocation5 + $0xc4] ss:$8 sps:$4 sm:$0xff]   ;;  %v821_v7 = vld [vmem:[#allocation5 + $0xc0] ss:$8 sps:$4 sm:$0xff]  }
  0x37   :  { %v974_v47 = vld [vmem:[#allocation2] sm:$0xff]  ;;  %v976_v49 = vld [vmem:[#allocation2 + $0x8] sm:$0xff]  ;;  %v819_v58 = vld [vmem:[#allocation5 + $0x1c4] ss:$8 sps:$4 sm:$0xff]   ;;  %s928_s1 = smov [#allocation7]  }
  0x38   :  { %519 = vmatpush1.bf16.msra.mxu1 %v773_v18  ;;  %v816_v48 = vld [vmem:[#allocation5 + $0x1b0] ss:$8 sps:$4 sm:$0xff]   ;;  %v44_v50 = vcombine.high %v974_v47, %v974_v47  ;;  %v49_v51 = vsel %vm48_vm0, %v974_v47, 0.0  ;;  %v77_v52 = vsel %vm48_vm0, %v974_v47, -inf  ;;  %v45_v54 = vcombine.high %v976_v49, %v976_v49  ;;  %v822_v8 = vld [vmem:[#allocation5 + $0x1c0] ss:$8 sps:$4 sm:$0xff]  }
  0x39   :  { %560 = vmatpush1.bf16.msra.mxu0 %v774_v19  ;;  %520 = vmatprep.subr.bf16.mxu1 %v775_v20  ;;  %v50_v55 = vrot.slane %v49_v51, 4  ;;  %v63_v56 = vsel %vm48_vm0, %v976_v49, 0.0  ;;  %v78_v57 = vrot.slane %v77_v52, 4  ;;  %v91_v62 = vsel %vm48_vm0, %v976_v49, -inf  ;;  %v823_v13 = vld [vmem:[#allocation5 + $0xd4] ss:$8 sps:$4 sm:$0xff]  }
  0x3a   :  { %561 = vmatprep.subr.bf16.mxu0 %v777_v21  ;;  %v56_v59 = vsel %vm48_vm0, %v44_v50, 0.0  ;;  %v84_v60 = vsel %vm48_vm0, %v44_v50, -inf  ;;  %v64_v61 = vrot.slane %v63_v56, 4  ;;  %v70_v0 = vsel %vm48_vm0, %v45_v54, 0.0  ;;  %v825_v14 = vld [vmem:[#allocation5 + $0x1d4] ss:$8 sps:$4 sm:$0xff]  }
  0x3b   :  { %v57_v63 = vrot.slane %v56_v59, 4  ;;  %v85_v1 = vrot.slane %v84_v60, 4  ;;  %v98_v2 = vsel %vm48_vm0, %v45_v54, -inf  ;;  %v71_v3 = vrot.slane %v70_v0, 4  ;;  %v834_v50 = vld [vmem:[#allocation5 + $0x1e0] ss:$8 sps:$4 sm:$0xff]  }
  0x3c   :  { %521 = vmatpush1.bf16.msra.mxu1 %v779_v22  ;;  %v99_v4 = vrot.slane %v98_v2, 4  ;;  %v51_v5 = vadd.f32 %v50_v55, %v49_v51  ;;  %v65_v6 = vadd.f32 %v64_v61, %v63_v56  ;;  %v79_v11 = vmax.f32 %v77_v52, %v78_v57  ;;  %v835_v55 = vld [vmem:[#allocation5 + $0xf4] ss:$8 sps:$4 sm:$0xff]   ;;  %s658_s6 = sshll.u32 %s928_s1, 4  ;;  %s659_s6 = int_to_ptr.vmem [resolvable:$true] %s658_s6 }
  0x3d   :  { %562 = vmatpush1.bf16.msra.mxu0 %v780_v23  ;;  %522 = vmatprep.subr.bf16.mxu1 %v781_v24  ;;  %v58_v9 = vadd.f32 %v57_v63, %v56_v59  ;;  %v86_v10 = vmax.f32 %v84_v60, %v85_v1  ;;  %v92_v12 = vrot.slane %v91_v62, 4  ;;  %v72_v15 = vadd.f32 %v71_v3, %v70_v0  ;;  %v837_v56 = vld [vmem:[#allocation5 + $0x1f4] ss:$8 sps:$4 sm:$0xff]   ;;  %v839_v63 = vld [vmem:[#allocation5 + $0xf0] ss:$8 sps:$4 sm:$0xff]   ;;  %s895_s7 = scalar_lea.vmem %s659_s6, 256  ;;  %p900_p3 = scmp.lt.s32.totalorder %s659_s6, %s659_s6 }
  0x3e   :  { %563 = vmatprep.subr.bf16.mxu0 %v783_v25  ;;  %v100_v16 = vmax.f32 %v98_v2, %v99_v4  ;;  %v52_v17 = vrot.slane %v51_v5, 2  ;;  %v66_v18 = vrot.slane %v65_v6, 2  ;;  %v80_v21 = vrot.slane %v79_v11, 2  ;;  %v840_v0 = vld [vmem:[#allocation5 + $0x1f0] ss:$8 sps:$4 sm:$0xff]   ;;  %p896_p2 = scmp.ne.s32.totalorder %s659_s6, %s895_s7  ;;  %p901_p4 = scmp.lt.s32.totalorder %s895_s7, %s895_s7 }
  0x3f   :  { %v59_v19 = vrot.slane %v58_v9, 2  ;;  %v87_v20 = vrot.slane %v86_v10, 2  ;;  %v93_v22 = vmax.f32 %v91_v62, %v92_v12  ;;  %v73_v23 = vrot.slane %v72_v15, 2 }
  0x40   :  { %523 = vmatpush1.bf16.msra.mxu1 %v785_v26  ;;  %v101_v24 = vrot.slane %v100_v16, 2  ;;  %v53_v25 = vadd.f32 %v52_v17, %v51_v5  ;;  %v67_v26 = vadd.f32 %v66_v18, %v65_v6  ;;  %p902_p5 = por %p901_p4, %p900_p3 }
  0x41   :  { %564 = vmatpush1.bf16.msra.mxu0 %v786_v27  ;;  %524 = vmatprep.subr.bf16.mxu1 %v787_v28  ;;  %v827_v27 = vld [vmem:[#allocation5 + $0xd0] ss:$8 sps:$4 sm:$0xff]  }
  0x42   :  { %565 = vmatprep.subr.bf16.mxu0 %v789_v29  ;;  %v828_v28 = vld [vmem:[#allocation5 + $0x1d0] ss:$8 sps:$4 sm:$0xff]   ;;  %v60_v29 = vadd.f32 %v59_v19, %v58_v9  ;;  %p903_p6 = pnand %p902_p5, %p896_p2 }
  0x44   :  { %525 = vmatpush1.bf16.msra.mxu1 %v791_v30  ;;  %v88_v30 = vmax.f32 %v86_v10, %v87_v20 }
  0x45   :  { %566 = vmatpush1.bf16.msra.mxu0 %v792_v31  ;;  %526 = vmatprep.subr.bf16.mxu1 %v793_v32  ;;  %v81_v31 = vmax.f32 %v79_v11, %v80_v21  ;;  %v94_v32 = vrot.slane %v93_v22, 2 }
  0x46   :  { %567 = vmatprep.subr.bf16.mxu0 %v795_v33  ;;  %v829_v33 = vld [vmem:[#allocation5 + $0xe4] ss:$8 sps:$4 sm:$0xff]  }
  0x48   :  { %527 = vmatpush1.bf16.msra.mxu1 %v797_v34  ;;  %v831_v34 = vld [vmem:[#allocation5 + $0x1e4] ss:$8 sps:$4 sm:$0xff]  }
  0x49   :  { %568 = vmatpush1.bf16.msra.mxu0 %v798_v35  ;;  %528 = vmatprep.subr.bf16.mxu1 %v799_v36  ;;  %v74_v35 = vadd.f32 %v73_v23, %v72_v15  ;;  %v102_v36 = vmax.f32 %v100_v16, %v101_v24  ;;  %v610_v24 = vlaneseq }
  0x4a   :  { %569 = vmatprep.subr.bf16.mxu0 %v801_v37  ;;  %v54_v37 = vrot.slane %v53_v25, 1 }
  0x4c   :  { %529 = vmatpush1.bf16.msra.mxu1 %v803_v38  ;;  %v68_v38 = vrot.slane %v67_v26, 1 }
  0x4d   :  { %570 = vmatpush1.bf16.msra.mxu0 %v804_v39  ;;  %530 = vmatprep.subr.bf16.mxu1 %v805_v40  ;;  %v61_v39 = vrot.slane %v60_v29, 1  ;;  %v89_v40 = vrot.slane %v88_v30, 1 }
  0x4e   :  { %571 = vmatprep.subr.bf16.mxu0 %v807_v41  ;;  %v82_v41 = vrot.slane %v81_v31, 1 }
  0x4f   :  { %v62_v51 = vadd.f32 %v61_v39, %v60_v29  ;;  %v90_v52 = vmax.f32 %v88_v30, %v89_v40 }
  0x50   :  { %531 = vmatpush1.bf16.msra.mxu1 %v809_v42  ;;  %v95_v42 = vmax.f32 %v93_v22, %v94_v32  ;;  %v927_v22 = vmov 1966171168  }
  0x51   :  { %572 = vmatpush1.bf16.msra.mxu0 %v810_v43  ;;  %532 = vmatprep.subr.bf16.mxu1 %v811_v44  ;;  %v75_v43 = vrot.slane %v74_v35, 1  ;;  %v103_v44 = vrot.slane %v102_v36, 1  ;;  %v608_v23 = vunpack.c.l.s4 %v927_v22 }
  0x52   :  { %573 = vmatprep.subr.bf16.mxu0 %v813_v45  ;;  %v55_v45 = vadd.f32 %v54_v37, %v53_v25  ;;  %v96_v54 = vrot.slane %v95_v42, 1 }
  0x53   :  { %v76_v57 = vadd.f32 %v75_v43, %v74_v35  ;;  %v609_v25 = vunpack.c.0.s8 %v608_v23 }
  0x54   :  { %533 = vmatpush1.bf16.msra.mxu1 %v815_v46  ;;  %v69_v46 = vadd.f32 %v68_v38, %v67_v26  ;;  %v97_v59 = vmax.f32 %v95_v42, %v96_v54  ;;  %v611_v26 = vshrl.u32 %v610_v24, 7 }
  0x55   :  { %574 = vmatpush1.bf16.msra.mxu0 %v816_v48  ;;  %534 = vmatprep.subr.bf16.mxu1 %v817_v53  ;;  %v833_v48 = vld [vmem:[#allocation5 + $0xe0] ss:$8 sps:$4 sm:$0xff]   ;;  %v83_v53 = vmax.f32 %v81_v31, %v82_v41  ;;  %v111_v60 = vsel %vm109_vm1, %v76_v57, %v62_v51 }
  0x56   :  { %575 = vmatprep.subr.bf16.mxu0 %v819_v58  ;;  %v104_v58 = vmax.f32 %v102_v36, %v103_v44  ;;  %v110_v62 = vsel %vm109_vm1, %v69_v46, %v55_v45  ;;  %v123_v1 = vpack.c.bf16 %v111_v60, %v111_v60  ;;  %v631_v32 = vsub.s32 0, %v611_v26 }
  0x57   :  { %v118_v3 = vsel %vm109_vm1, %v97_v59, %v83_v53  ;;  %v122_v4 = vpack.c.bf16 %v110_v62, %v110_v62 }
  0x58   :  { %535 = vmatpush1.bf16.msra.mxu1 %v821_v7  ;;  %v119_v61 = vsel %vm109_vm1, %v104_v58, %v90_v52  ;;  %542 = vmatprep.mubr.bf16.mxu1 %v123_v1  ;;  %v124_v5 = vpack.c.bf16 %v118_v3, %v118_v3 }
  0x59   :  { %576 = vmatpush1.bf16.msra.mxu0 %v822_v8  ;;  %536 = vmatprep.subr.bf16.mxu1 %v823_v13  ;;  %v125_v2 = vpack.c.bf16 %v119_v61, %v119_v61 }
  0x5a   :  { %577 = vmatprep.subr.bf16.mxu0 %v825_v14 }
  0x5b   :  { %583 = vmatprep.mubr.bf16.mxu0 %v125_v2 }
  0x5c   :  { %537 = vmatpush1.bf16.msra.mxu1 %v827_v27 }
  0x5d   :  { %578 = vmatpush1.bf16.msra.mxu0 %v828_v28  ;;  %538 = vmatprep.subr.bf16.mxu1 %v829_v33  ;;  %v612_v28 = vsub.s32 %v609_v25, %v611_v26  ;;  %v635_v33 = vsub.s32 1, %v611_v26 }
  0x5e   :  { %579 = vmatprep.subr.bf16.mxu0 %v831_v34 }
  0x60   :  { %539 = vmatpush1.bf16.msra.mxu1 %v833_v48 }
  0x61   :  { %580 = vmatpush1.bf16.msra.mxu0 %v834_v50  ;;  %540 = vmatprep.subr.bf16.mxu1 %v835_v55 }
  0x62   :  { %581 = vmatprep.subr.bf16.mxu0 %v837_v56 }
  0x64   :  { %541 = vmatpush1.bf16.msra.mxu1 %v839_v63 }
  0x65   :  { %582 = vmatpush1.bf16.msra.mxu0 %v840_v0 }
  0x67   :  { %543 = vmatmul.mubr.bf16.vlgmr.msra.gmra.mrb[0].mxu1 %v122_v4 }
  0x68   :  { %584 = vmatmul.mubr.bf16.vlgmr.msra.gmra.mrb[0].mxu0 %v124_v5 }
 0x13a   :  { %v544_v6 = vpop.f32.mrb[0].mxu1 }
 0x13b   :  { %v585_v7 = vpop.f32.mrb[0].mxu0  ;;  %v546_v9 = vpop.f32.mrb[1].mxu1 }
 0x13c   :  { %v586_v8 = vadd.f32 %v585_v7, %v544_v6  ;;  %v587_v10 = vpop.f32.mrb[1].mxu0  ;;  %v548_v12 = vpop.f32.mrb[2].mxu1 }
 0x13d   :  { %v588_v11 = vadd.f32 %v587_v10, %v546_v9  ;;  %v589_v13 = vpop.f32.mrb[2].mxu0  ;;  %v549_v15 = vpop.f32.mrb[3].mxu1 }
 0x13e   :  { %v735_v14 = vmul.f32 -1.442695, %v586_v8  ;;  %v590_v16 = vpop.f32.mrb[3].mxu0 }
 0x13f   :  { %v736_v17 = vmul.f32 -1.442695, %v588_v11 }
 0x140   :  { %843 = vpow2.f32 %v735_v14 }
 0x141   :  { %845 = vpow2.f32 %v736_v17 }
 0x14a   :  { %v844_v18 = vpop.eup %843 }
 0x14b   :  { %v846_v19 = vpop.eup %845  ;;  %v598_v20 = vadd.f32 1.0, %v844_v18 }
 0x14c   :  { %v599_v21 = vadd.f32 1.0, %v846_v19 }
 0x14d   :  { %847 = vrcp.f32 %v598_v20 }
 0x14e   :  { %849 = vrcp.f32 %v599_v21 }
 0x157   :  { %v848_v27 = vpop.eup %847 }
 0x158   :  { %v850_v29 = vpop.eup %849 }
 0x159   :  { %v606_v30 = vcombine.low %v848_v27, %v850_v29 }
 0x15b   :  { %v613_v31 = vrot.slane %v606_v30, %v612_v28 }
 0x15d   :  { %v614_v34 = vcombine.high %v613_v31, %v613_v31  ;;  %v621_v35 = vrot.slane %v613_v31, %v612_v28 }
 0x15f   :  { %v628_v36 = vrot.slane %v614_v34, %v612_v28  ;;  %v632_v37 = vrot.slane %v621_v35, %v631_v32  ;;  %v636_v38 = vrot.slane %v621_v35, %v635_v33 }
 0x161   :  { %v640_v39 = vrot.slane %v628_v36, %v631_v32  ;;  %v644_v40 = vrot.slane %v628_v36, %v635_v33  ;;  %v645_v41 = vcombine.low %v632_v37, %v636_v38 }
 0x163   :  { %v646_v42 = vcombine.low %v640_v39, %v644_v40  ;;  %v649_v43 = vmul.f32 %v645_v41, %v974_v47 }
 0x165   :  { %v650_v44 = vmul.f32 %v646_v42, %v976_v49  ;;  %651 = vst [vmem:[#allocation7] sm:$0xff] %v649_v43 }
 0x167   :  { %652 = vst [vmem:[#allocation7 + $0x8] sm:$0xff] %v650_v44 }
 0x168   :  { %906 = shalt.err (!%p903_p6)
}
 0x169   :  { %s907_s10 = scalar_lea.hbm %s1017_s2, 256 }
 0x16a   :  { %p908_p7 = scmp.ne.s32.totalorder %s1017_s2, %s907_s10  ;;  %p911_p8 = scmp.lt.u32.totalorder %s907_s10, %s1017_s2 }
 0x16c   :  { %p913_p9 = pnand %p911_p8, %p908_p7 }
 0x16e   :  { %916 = shalt.err (!%p913_p9)
}
 0x16f   :  { %664 = dma.vmem_to_hbm [thread:$0]  %s659_s6, 256, %s1017_s2, [#allocation4], %s924_s19, %s924_s19, %s925_s20  }
 0x170   :  { %921 = dma.done.wait [#allocation4], 256  }
 0x171   :  { %922 = vsyncadd [#allocation4], 4294967040 }
 0x172   :  { %668 = vsyncpa [#allocation3], 1 }
 0x173   :  { %669 = vsyncpa [#allocation6], 1 }
 0x174   :  { %670 = vsyncpa [#allocation4], 1 }

// kernel: tpu_custom_call.1
= control target key start
LH: loop header
LB: loop body
LE: loop exit
PB: predicated region body
PF: predicated region fallthrough
CT: control target
= control target key end

     0   :  { %7 = vsyncpa [#allocation3], 0  ;;  %s1015_s0 = inlined_call_operand.hbm [shape: f32[2,4,256], index: 0, kind: input, shape index: {}]   ;;  %s1016_s1 = inlined_call_operand.hbm [shape: bf16[512,256], index: 1, kind: input, shape index: {}]   ;;  %s1017_s2 = inlined_call_operand.hbm [shape: f32[2,4,256], index: 2, kind: output, shape index: {}]  }
   0x1   :  { %8 = vsyncpa [#allocation6], 0 }
   0x2   :  { %9 = vsyncpa [#allocation4], 0  ;;  %s923_s9 = smov [#allocation2]   ;;  %s851_s13 = scalar_lea.hbm %s1015_s0, 256 }
   0x3   :  { %s15_s10 = sshll.u32 %s923_s9, 4  ;;  %p852_p0 = scmp.ne.s32.totalorder %s1015_s0, %s851_s13  ;;  %s16_s10 = int_to_ptr.vmem [resolvable:$true] %s15_s10 }
   0x4   :  { %p855_p1 = scmp.lt.u32.totalorder %s851_s13, %s1015_s0 }
   0x6   :  { %p857_p2 = pnand %p855_p1, %p852_p0 }
   0x8   :  { %860 = shalt.err (!%p857_p2)
}
   0x9   :  { %s861_s18 = scalar_lea.vmem %s16_s10, 256  ;;  %p866_p4 = scmp.lt.s32.totalorder %s16_s10, %s16_s10 }
   0xa   :  { %p862_p3 = scmp.ne.s32.totalorder %s16_s10, %s861_s18  ;;  %p867_p5 = scmp.lt.s32.totalorder %s861_s18, %s861_s18 }
   0xc   :  { %p868_p6 = por %p867_p5, %p866_p4 }
   0xe   :  { %p869_p7 = pnand %p868_p6, %p862_p3 }
  0x10   :  { %872 = shalt.err (!%p869_p7)
}
  0x11   :  { %s924_s19 = smov 128   ;;  %s925_s20 = smov 8  }
  0x12   :  { %21 = dma.hbm_to_vmem [thread:$0]  %s1015_s0, 256, %s16_s10, [#allocation3], %s924_s19, %s924_s19, %s925_s20  }
  0x13   :  { %s926_s23 = smov [#allocation5]   ;;  %s873_s27 = scalar_lea.hbm %s1016_s1, 8192 }
  0x14   :  { %s27_s24 = sshll.u32 %s926_s23, 4  ;;  %p874_p8 = scmp.ne.s32.totalorder %s1016_s1, %s873_s27  ;;  %s28_s24 = int_to_ptr.vmem [resolvable:$true] %s27_s24 }
  0x15   :  { %p877_p9 = scmp.lt.u32.totalorder %s873_s27, %s1016_s1 }
  0x17   :  { %p879_p10 = pnand %p877_p9, %p874_p8 }
  0x19   :  { %882 = shalt.err (!%p879_p10)
}
  0x1a   :  { %s883_s4 = scalar_lea.vmem %s28_s24, 8192  ;;  %p888_p12 = scmp.lt.s32.totalorder %s28_s24, %s28_s24 }
  0x1b   :  { %p884_p11 = scmp.ne.s32.totalorder %s28_s24, %s883_s4  ;;  %p889_p13 = scmp.lt.s32.totalorder %s883_s4, %s883_s4 }
  0x1d   :  { %p890_p0 = por %p889_p13, %p888_p12 }
  0x1f   :  { %p891_p1 = pnand %p890_p0, %p884_p11 }
  0x21   :  { %894 = shalt.err (!%p891_p1)
}
  0x22   :  { %33 = dma.hbm_to_vmem [thread:$0]  %s1016_s1, 8192, %s28_s24, [#allocation6], %s924_s19, %s924_s19, %s925_s20  }
  0x23   :  { %917 = dma.done.wait [#allocation3], 256  }
  0x24   :  { %918 = vsyncadd [#allocation3], 4294967040 }
  0x25   :  { %919 = dma.done.wait [#allocation6], 8192  }
  0x26   :  { %920 = vsyncadd [#allocation6], 4294959104  ;;  %v745_v0 = vld [vmem:[#allocation5 + $0x4] ss:$8 sps:$4 sm:$0xff]   ;;  %v749_v2 = vld [vmem:[#allocation5] ss:$8 sps:$4 sm:$0xff]  }
  0x27   :  { %v747_v1 = vld [vmem:[#allocation5 + $0x104] ss:$8 sps:$4 sm:$0xff]   ;;  %510 = vmatprep.subr.bf16.mxu1 %v745_v0  ;;  %v750_v3 = vld [vmem:[#allocation5 + $0x100] ss:$8 sps:$4 sm:$0xff]   ;;  %v751_v4 = vld [vmem:[#allocation5 + $0x14] ss:$8 sps:$4 sm:$0xff]  }
  0x28   :  { %551 = vmatprep.subr.bf16.mxu0 %v747_v1  ;;  %511 = vmatpush1.bf16.msra.mxu1 %v749_v2  ;;  %v753_v5 = vld [vmem:[#allocation5 + $0x114] ss:$8 sps:$4 sm:$0xff]   ;;  %v755_v6 = vld [vmem:[#allocation5 + $0x10] ss:$8 sps:$4 sm:$0xff]   ;;  %v757_v8 = vld [vmem:[#allocation5 + $0x24] ss:$8 sps:$4 sm:$0xff]  }
  0x29   :  { %552 = vmatpush1.bf16.msra.mxu0 %v750_v3  ;;  %512 = vmatprep.subr.bf16.mxu1 %v751_v4  ;;  %v756_v7 = vld [vmem:[#allocation5 + $0x110] ss:$8 sps:$4 sm:$0xff]   ;;  %v759_v9 = vld [vmem:[#allocation5 + $0x124] ss:$8 sps:$4 sm:$0xff]   ;;  %v761_v10 = vld [vmem:[#allocation5 + $0x20] ss:$8 sps:$4 sm:$0xff]  }
  0x2a   :  { %553 = vmatprep.subr.bf16.mxu0 %v753_v5  ;;  %v762_v11 = vld [vmem:[#allocation5 + $0x120] ss:$8 sps:$4 sm:$0xff]   ;;  %v763_v12 = vld [vmem:[#allocation5 + $0x34] ss:$8 sps:$4 sm:$0xff]   ;;  %v767_v14 = vld [vmem:[#allocation5 + $0x30] ss:$8 sps:$4 sm:$0xff]  }
  0x2b   :  { %v765_v13 = vld [vmem:[#allocation5 + $0x134] ss:$8 sps:$4 sm:$0xff]   ;;  %v768_v15 = vld [vmem:[#allocation5 + $0x130] ss:$8 sps:$4 sm:$0xff]   ;;  %v769_v16 = vld [vmem:[#allocation5 + $0x44] ss:$8 sps:$4 sm:$0xff]  }
  0x2c   :  { %513 = vmatpush1.bf16.msra.mxu1 %v755_v6  ;;  %v771_v17 = vld [vmem:[#allocation5 + $0x144] ss:$8 sps:$4 sm:$0xff]   ;;  %v773_v18 = vld [vmem:[#allocation5 + $0x40] ss:$8 sps:$4 sm:$0xff]   ;;  %v775_v20 = vld [vmem:[#allocation5 + $0x54] ss:$8 sps:$4 sm:$0xff]  }
  0x2d   :  { %554 = vmatpush1.bf16.msra.mxu0 %v756_v7  ;;  %514 = vmatprep.subr.bf16.mxu1 %v757_v8  ;;  %v774_v19 = vld [vmem:[#allocation5 + $0x140] ss:$8 sps:$4 sm:$0xff]   ;;  %v777_v21 = vld [vmem:[#allocation5 + $0x154] ss:$8 sps:$4 sm:$0xff]   ;;  %v779_v22 = vld [vmem:[#allocation5 + $0x50] ss:$8 sps:$4 sm:$0xff]  }
  0x2e   :  { %555 = vmatprep.subr.bf16.mxu0 %v759_v9  ;;  %v780_v23 = vld [vmem:[#allocation5 + $0x150] ss:$8 sps:$4 sm:$0xff]   ;;  %v781_v24 = vld [vmem:[#allocation5 + $0x64] ss:$8 sps:$4 sm:$0xff]   ;;  %v785_v26 = vld [vmem:[#allocation5 + $0x60] ss:$8 sps:$4 sm:$0xff]  }
  0x2f   :  { %v783_v25 = vld [vmem:[#allocation5 + $0x164] ss:$8 sps:$4 sm:$0xff]   ;;  %v786_v27 = vld [vmem:[#allocation5 + $0x160] ss:$8 sps:$4 sm:$0xff]   ;;  %v787_v28 = vld [vmem:[#allocation5 + $0x74] ss:$8 sps:$4 sm:$0xff]  }
  0x30   :  { %515 = vmatpush1.bf16.msra.mxu1 %v761_v10  ;;  %v789_v29 = vld [vmem:[#allocation5 + $0x174] ss:$8 sps:$4 sm:$0xff]   ;;  %v791_v30 = vld [vmem:[#allocation5 + $0x70] ss:$8 sps:$4 sm:$0xff]   ;;  %v793_v32 = vld [vmem:[#allocation5 + $0x84] ss:$8 sps:$4 sm:$0xff]  }
  0x31   :  { %556 = vmatpush1.bf16.msra.mxu0 %v762_v11  ;;  %516 = vmatprep.subr.bf16.mxu1 %v763_v12  ;;  %v792_v31 = vld [vmem:[#allocation5 + $0x170] ss:$8 sps:$4 sm:$0xff]   ;;  %v795_v33 = vld [vmem:[#allocation5 + $0x184] ss:$8 sps:$4 sm:$0xff]   ;;  %v797_v34 = vld [vmem:[#allocation5 + $0x80] ss:$8 sps:$4 sm:$0xff]  }
  0x32   :  { %557 = vmatprep.subr.bf16.mxu0 %v765_v13  ;;  %v798_v35 = vld [vmem:[#allocation5 + $0x180] ss:$8 sps:$4 sm:$0xff]   ;;  %v799_v36 = vld [vmem:[#allocation5 + $0x94] ss:$8 sps:$4 sm:$0xff]   ;;  %v803_v38 = vld [vmem:[#allocation5 + $0x90] ss:$8 sps:$4 sm:$0xff]  }
  0x33   :  { %v801_v37 = vld [vmem:[#allocation5 + $0x194] ss:$8 sps:$4 sm:$0xff]   ;;  %v804_v39 = vld [vmem:[#allocation5 + $0x190] ss:$8 sps:$4 sm:$0xff]   ;;  %v805_v40 = vld [vmem:[#allocation5 + $0xa4] ss:$8 sps:$4 sm:$0xff]  }
  0x34   :  { %517 = vmatpush1.bf16.msra.mxu1 %v767_v14  ;;  %v807_v41 = vld [vmem:[#allocation5 + $0x1a4] ss:$8 sps:$4 sm:$0xff]   ;;  %v809_v42 = vld [vmem:[#allocation5 + $0xa0] ss:$8 sps:$4 sm:$0xff]   ;;  %v811_v44 = vld [vmem:[#allocation5 + $0xb4] ss:$8 sps:$4 sm:$0xff]  }
  0x35   :  { %558 = vmatpush1.bf16.msra.mxu0 %v768_v15  ;;  %518 = vmatprep.subr.bf16.mxu1 %v769_v16  ;;  %v810_v43 = vld [vmem:[#allocation5 + $0x1a0] ss:$8 sps:$4 sm:$0xff]   ;;  %vm48_vm0 = vcmask 1043456   ;;  %v813_v45 = vld [vmem:[#allocation5 + $0x1b4] ss:$8 sps:$4 sm:$0xff]   ;;  %vm109_vm1 = vcmask 1041409  }
  0x36   :  { %559 = vmatprep.subr.bf16.mxu0 %v771_v17  ;;  %v815_v46 = vld [vmem:[#allocation5 + $0xb0] ss:$8 sps:$4 sm:$0xff]   ;;  %v817_v53 = vld [vmem:[#allocation5 + $0xc4] ss:$8 sps:$4 sm:$0xff]   ;;  %v821_v7 = vld [vmem:[#allocation5 + $0xc0] ss:$8 sps:$4 sm:$0xff]  }
  0x37   :  { %v974_v47 = vld [vmem:[#allocation2] sm:$0xff]  ;;  %v976_v49 = vld [vmem:[#allocation2 + $0x8] sm:$0xff]  ;;  %v819_v58 = vld [vmem:[#allocation5 + $0x1c4] ss:$8 sps:$4 sm:$0xff]   ;;  %s928_s1 = smov [#allocation7]  }
  0x38   :  { %519 = vmatpush1.bf16.msra.mxu1 %v773_v18  ;;  %v816_v48 = vld [vmem:[#allocation5 + $0x1b0] ss:$8 sps:$4 sm:$0xff]   ;;  %v44_v50 = vcombine.high %v974_v47, %v974_v47  ;;  %v49_v51 = vsel %vm48_vm0, %v974_v47, 0.0  ;;  %v77_v52 = vsel %vm48_vm0, %v974_v47, -inf  ;;  %v45_v54 = vcombine.high %v976_v49, %v976_v49  ;;  %v822_v8 = vld [vmem:[#allocation5 + $0x1c0] ss:$8 sps:$4 sm:$0xff]  }
  0x39   :  { %560 = vmatpush1.bf16.msra.mxu0 %v774_v19  ;;  %520 = vmatprep.subr.bf16.mxu1 %v775_v20  ;;  %v50_v55 = vrot.slane %v49_v51, 4  ;;  %v63_v56 = vsel %vm48_vm0, %v976_v49, 0.0  ;;  %v78_v57 = vrot.slane %v77_v52, 4  ;;  %v91_v62 = vsel %vm48_vm0, %v976_v49, -inf  ;;  %v823_v13 = vld [vmem:[#allocation5 + $0xd4] ss:$8 sps:$4 sm:$0xff]  }
  0x3a   :  { %561 = vmatprep.subr.bf16.mxu0 %v777_v21  ;;  %v56_v59 = vsel %vm48_vm0, %v44_v50, 0.0  ;;  %v84_v60 = vsel %vm48_vm0, %v44_v50, -inf  ;;  %v64_v61 = vrot.slane %v63_v56, 4  ;;  %v70_v0 = vsel %vm48_vm0, %v45_v54, 0.0  ;;  %v825_v14 = vld [vmem:[#allocation5 + $0x1d4] ss:$8 sps:$4 sm:$0xff]  }
  0x3b   :  { %v57_v63 = vrot.slane %v56_v59, 4  ;;  %v85_v1 = vrot.slane %v84_v60, 4  ;;  %v98_v2 = vsel %vm48_vm0, %v45_v54, -inf  ;;  %v71_v3 = vrot.slane %v70_v0, 4  ;;  %v834_v50 = vld [vmem:[#allocation5 + $0x1e0] ss:$8 sps:$4 sm:$0xff]  }
  0x3c   :  { %521 = vmatpush1.bf16.msra.mxu1 %v779_v22  ;;  %v99_v4 = vrot.slane %v98_v2, 4  ;;  %v51_v5 = vadd.f32 %v50_v55, %v49_v51  ;;  %v65_v6 = vadd.f32 %v64_v61, %v63_v56  ;;  %v79_v11 = vmax.f32 %v77_v52, %v78_v57  ;;  %v835_v55 = vld [vmem:[#allocation5 + $0xf4] ss:$8 sps:$4 sm:$0xff]   ;;  %s658_s6 = sshll.u32 %s928_s1, 4  ;;  %s659_s6 = int_to_ptr.vmem [resolvable:$true] %s658_s6 }
  0x3d   :  { %562 = vmatpush1.bf16.msra.mxu0 %v780_v23  ;;  %522 = vmatprep.subr.bf16.mxu1 %v781_v24  ;;  %v58_v9 = vadd.f32 %v57_v63, %v56_v59  ;;  %v86_v10 = vmax.f32 %v84_v60, %v85_v1  ;;  %v92_v12 = vrot.slane %v91_v62, 4  ;;  %v72_v15 = vadd.f32 %v71_v3, %v70_v0  ;;  %v837_v56 = vld [vmem:[#allocation5 + $0x1f4] ss:$8 sps:$4 sm:$0xff]   ;;  %v839_v63 = vld [vmem:[#allocation5 + $0xf0] ss:$8 sps:$4 sm:$0xff]   ;;  %s895_s7 = scalar_lea.vmem %s659_s6, 256  ;;  %p900_p3 = scmp.lt.s32.totalorder %s659_s6, %s659_s6 }
  0x3e   :  { %563 = vmatprep.subr.bf16.mxu0 %v783_v25  ;;  %v100_v16 = vmax.f32 %v98_v2, %v99_v4  ;;  %v52_v17 = vrot.slane %v51_v5, 2  ;;  %v66_v18 = vrot.slane %v65_v6, 2  ;;  %v80_v21 = vrot.slane %v79_v11, 2  ;;  %v840_v0 = vld [vmem:[#allocation5 + $0x1f0] ss:$8 sps:$4 sm:$0xff]   ;;  %p896_p2 = scmp.ne.s32.totalorder %s659_s6, %s895_s7  ;;  %p901_p4 = scmp.lt.s32.totalorder %s895_s7, %s895_s7 }
  0x3f   :  { %v59_v19 = vrot.slane %v58_v9, 2  ;;  %v87_v20 = vrot.slane %v86_v10, 2  ;;  %v93_v22 = vmax.f32 %v91_v62, %v92_v12  ;;  %v73_v23 = vrot.slane %v72_v15, 2 }
  0x40   :  { %523 = vmatpush1.bf16.msra.mxu1 %v785_v26  ;;  %v101_v24 = vrot.slane %v100_v16, 2  ;;  %v53_v25 = vadd.f32 %v52_v17, %v51_v5  ;;  %v67_v26 = vadd.f32 %v66_v18, %v65_v6  ;;  %p902_p5 = por %p901_p4, %p900_p3 }
  0x41   :  { %564 = vmatpush1.bf16.msra.mxu0 %v786_v27  ;;  %524 = vmatprep.subr.bf16.mxu1 %v787_v28  ;;  %v827_v27 = vld [vmem:[#allocation5 + $0xd0] ss:$8 sps:$4 sm:$0xff]  }
  0x42   :  { %565 = vmatprep.subr.bf16.mxu0 %v789_v29  ;;  %v828_v28 = vld [vmem:[#allocation5 + $0x1d0] ss:$8 sps:$4 sm:$0xff]   ;;  %v60_v29 = vadd.f32 %v59_v19, %v58_v9  ;;  %p903_p6 = pnand %p902_p5, %p896_p2 }
  0x44   :  { %525 = vmatpush1.bf16.msra.mxu1 %v791_v30  ;;  %v88_v30 = vmax.f32 %v86_v10, %v87_v20 }
  0x45   :  { %566 = vmatpush1.bf16.msra.mxu0 %v792_v31  ;;  %526 = vmatprep.subr.bf16.mxu1 %v793_v32  ;;  %v81_v31 = vmax.f32 %v79_v11, %v80_v21  ;;  %v94_v32 = vrot.slane %v93_v22, 2 }
  0x46   :  { %567 = vmatprep.subr.bf16.mxu0 %v795_v33  ;;  %v829_v33 = vld [vmem:[#allocation5 + $0xe4] ss:$8 sps:$4 sm:$0xff]  }
  0x48   :  { %527 = vmatpush1.bf16.msra.mxu1 %v797_v34  ;;  %v831_v34 = vld [vmem:[#allocation5 + $0x1e4] ss:$8 sps:$4 sm:$0xff]  }
  0x49   :  { %568 = vmatpush1.bf16.msra.mxu0 %v798_v35  ;;  %528 = vmatprep.subr.bf16.mxu1 %v799_v36  ;;  %v74_v35 = vadd.f32 %v73_v23, %v72_v15  ;;  %v102_v36 = vmax.f32 %v100_v16, %v101_v24  ;;  %v610_v24 = vlaneseq }
  0x4a   :  { %569 = vmatprep.subr.bf16.mxu0 %v801_v37  ;;  %v54_v37 = vrot.slane %v53_v25, 1 }
  0x4c   :  { %529 = vmatpush1.bf16.msra.mxu1 %v803_v38  ;;  %v68_v38 = vrot.slane %v67_v26, 1 }
  0x4d   :  { %570 = vmatpush1.bf16.msra.mxu0 %v804_v39  ;;  %530 = vmatprep.subr.bf16.mxu1 %v805_v40  ;;  %v61_v39 = vrot.slane %v60_v29, 1  ;;  %v89_v40 = vrot.slane %v88_v30, 1 }
  0x4e   :  { %571 = vmatprep.subr.bf16.mxu0 %v807_v41  ;;  %v82_v41 = vrot.slane %v81_v31, 1 }
  0x4f   :  { %v62_v51 = vadd.f32 %v61_v39, %v60_v29  ;;  %v90_v52 = vmax.f32 %v88_v30, %v89_v40 }
  0x50   :  { %531 = vmatpush1.bf16.msra.mxu1 %v809_v42  ;;  %v95_v42 = vmax.f32 %v93_v22, %v94_v32  ;;  %v927_v22 = vmov 1966171168  }
  0x51   :  { %572 = vmatpush1.bf16.msra.mxu0 %v810_v43  ;;  %532 = vmatprep.subr.bf16.mxu1 %v811_v44  ;;  %v75_v43 = vrot.slane %v74_v35, 1  ;;  %v103_v44 = vrot.slane %v102_v36, 1  ;;  %v608_v23 = vunpack.c.l.s4 %v927_v22 }
  0x52   :  { %573 = vmatprep.subr.bf16.mxu0 %v813_v45  ;;  %v55_v45 = vadd.f32 %v54_v37, %v53_v25  ;;  %v96_v54 = vrot.slane %v95_v42, 1 }
  0x53   :  { %v76_v57 = vadd.f32 %v75_v43, %v74_v35  ;;  %v609_v25 = vunpack.c.0.s8 %v608_v23 }
  0x54   :  { %533 = vmatpush1.bf16.msra.mxu1 %v815_v46  ;;  %v69_v46 = vadd.f32 %v68_v38, %v67_v26  ;;  %v97_v59 = vmax.f32 %v95_v42, %v96_v54  ;;  %v611_v26 = vshrl.u32 %v610_v24, 7 }
  0x55   :  { %574 = vmatpush1.bf16.msra.mxu0 %v816_v48  ;;  %534 = vmatprep.subr.bf16.mxu1 %v817_v53  ;;  %v833_v48 = vld [vmem:[#allocation5 + $0xe0] ss:$8 sps:$4 sm:$0xff]   ;;  %v83_v53 = vmax.f32 %v81_v31, %v82_v41  ;;  %v111_v60 = vsel %vm109_vm1, %v76_v57, %v62_v51 }
  0x56   :  { %575 = vmatprep.subr.bf16.mxu0 %v819_v58  ;;  %v104_v58 = vmax.f32 %v102_v36, %v103_v44  ;;  %v110_v62 = vsel %vm109_vm1, %v69_v46, %v55_v45  ;;  %v123_v1 = vpack.c.bf16 %v111_v60, %v111_v60  ;;  %v631_v32 = vsub.s32 0, %v611_v26 }
  0x57   :  { %v118_v3 = vsel %vm109_vm1, %v97_v59, %v83_v53  ;;  %v122_v4 = vpack.c.bf16 %v110_v62, %v110_v62 }
  0x58   :  { %535 = vmatpush1.bf16.msra.mxu1 %v821_v7  ;;  %v119_v61 = vsel %vm109_vm1, %v104_v58, %v90_v52  ;;  %542 = vmatprep.mubr.bf16.mxu1 %v123_v1  ;;  %v124_v5 = vpack.c.bf16 %v118_v3, %v118_v3 }
  0x59   :  { %576 = vmatpush1.bf16.msra.mxu0 %v822_v8  ;;  %536 = vmatprep.subr.bf16.mxu1 %v823_v13  ;;  %v125_v2 = vpack.c.bf16 %v119_v61, %v119_v61 }
  0x5a   :  { %577 = vmatprep.subr.bf16.mxu0 %v825_v14 }
  0x5b   :  { %583 = vmatprep.mubr.bf16.mxu0 %v125_v2 }
  0x5c   :  { %537 = vmatpush1.bf16.msra.mxu1 %v827_v27 }
  0x5d   :  { %578 = vmatpush1.bf16.msra.mxu0 %v828_v28  ;;  %538 = vmatprep.subr.bf16.mxu1 %v829_v33  ;;  %v612_v28 = vsub.s32 %v609_v25, %v611_v26  ;;  %v635_v33 = vsub.s32 1, %v611_v26 }
  0x5e   :  { %579 = vmatprep.subr.bf16.mxu0 %v831_v34 }
  0x60   :  { %539 = vmatpush1.bf16.msra.mxu1 %v833_v48 }
  0x61   :  { %580 = vmatpush1.bf16.msra.mxu0 %v834_v50  ;;  %540 = vmatprep.subr.bf16.mxu1 %v835_v55 }
  0x62   :  { %581 = vmatprep.subr.bf16.mxu0 %v837_v56 }
  0x64   :  { %541 = vmatpush1.bf16.msra.mxu1 %v839_v63 }
  0x65   :  { %582 = vmatpush1.bf16.msra.mxu0 %v840_v0 }
  0x67   :  { %543 = vmatmul.mubr.bf16.vlgmr.msra.gmra.mrb[0].mxu1 %v122_v4 }
  0x68   :  { %584 = vmatmul.mubr.bf16.vlgmr.msra.gmra.mrb[0].mxu0 %v124_v5 }
 0x13a   :  { %v544_v6 = vpop.f32.mrb[0].mxu1 }
 0x13b   :  { %v585_v7 = vpop.f32.mrb[0].mxu0  ;;  %v546_v9 = vpop.f32.mrb[1].mxu1 }
 0x13c   :  { %v586_v8 = vadd.f32 %v585_v7, %v544_v6  ;;  %v587_v10 = vpop.f32.mrb[1].mxu0  ;;  %v548_v12 = vpop.f32.mrb[2].mxu1 }
 0x13d   :  { %v588_v11 = vadd.f32 %v587_v10, %v546_v9  ;;  %v589_v13 = vpop.f32.mrb[2].mxu0  ;;  %v549_v15 = vpop.f32.mrb[3].mxu1 }
 0x13e   :  { %v735_v14 = vmul.f32 -1.442695, %v586_v8  ;;  %v590_v16 = vpop.f32.mrb[3].mxu0 }
 0x13f   :  { %v736_v17 = vmul.f32 -1.442695, %v588_v11 }
 0x140   :  { %843 = vpow2.f32 %v735_v14 }
 0x141   :  { %845 = vpow2.f32 %v736_v17 }
 0x14a   :  { %v844_v18 = vpop.eup %843 }
 0x14b   :  { %v846_v19 = vpop.eup %845  ;;  %v598_v20 = vadd.f32 1.0, %v844_v18 }
 0x14c   :  { %v599_v21 = vadd.f32 1.0, %v846_v19 }
 0x14d   :  { %847 = vrcp.f32 %v598_v20 }
 0x14e   :  { %849 = vrcp.f32 %v599_v21 }
 0x157   :  { %v848_v27 = vpop.eup %847 }
 0x158   :  { %v850_v29 = vpop.eup %849 }
 0x159   :  { %v606_v30 = vcombine.low %v848_v27, %v850_v29 }
 0x15b   :  { %v613_v31 = vrot.slane %v606_v30, %v612_v28 }
 0x15d   :  { %v614_v34 = vcombine.high %v613_v31, %v613_v31  ;;  %v621_v35 = vrot.slane %v613_v31, %v612_v28 }
 0x15f   :  { %v628_v36 = vrot.slane %v614_v34, %v612_v28  ;;  %v632_v37 = vrot.slane %v621_v35, %v631_v32  ;;  %v636_v38 = vrot.slane %v621_v35, %v635_v33 }
 0x161   :  { %v640_v39 = vrot.slane %v628_v36, %v631_v32  ;;  %v644_v40 = vrot.slane %v628_v36, %v635_v33  ;;  %v645_v41 = vcombine.low %v632_v37, %v636_v38 }
 0x163   :  { %v646_v42 = vcombine.low %v640_v39, %v644_v40  ;;  %v649_v43 = vmul.f32 %v645_v41, %v974_v47 }
 0x165   :  { %v650_v44 = vmul.f32 %v646_v42, %v976_v49  ;;  %651 = vst [vmem:[#allocation7] sm:$0xff] %v649_v43 }
 0x167   :  { %652 = vst [vmem:[#allocation7 + $0x8] sm:$0xff] %v650_v44 }
 0x168   :  { %906 = shalt.err (!%p903_p6)
}
 0x169   :  { %s907_s10 = scalar_lea.hbm %s1017_s2, 256 }
 0x16a   :  { %p908_p7 = scmp.ne.s32.totalorder %s1017_s2, %s907_s10  ;;  %p911_p8 = scmp.lt.u32.totalorder %s907_s10, %s1017_s2 }
 0x16c   :  { %p913_p9 = pnand %p911_p8, %p908_p7 }
 0x16e   :  { %916 = shalt.err (!%p913_p9)
}
 0x16f   :  { %664 = dma.vmem_to_hbm [thread:$0]  %s659_s6, 256, %s1017_s2, [#allocation4], %s924_s19, %s924_s19, %s925_s20  }
 0x170   :  { %921 = dma.done.wait [#allocation4], 256  }
 0x171   :  { %922 = vsyncadd [#allocation4], 4294967040 }
 0x172   :  { %668 = vsyncpa [#allocation3], 1 }
 0x173   :  { %669 = vsyncpa [#allocation6], 1 }
 0x174   :  { %670 = vsyncpa [#allocation4], 1 }

</bundles_post_ra>
